<compile_context>
chip_gen: v7x
topology: tpu7x:2x2x1
jax: 0.10.0
libtpu: 0.0.40
codegen_flags: <defaults>
</compile_context>

<pallas_src>
import functools

import jax
import jax.numpy as jnp
from jax.experimental import pallas as pl
from jax.experimental.pallas import tpu as pltpu


def _max_loss_kernel(logits_ref, targets_ref, out_ref, m_sc, l_sc, t_sc,
                     *, c_tile: int, mask_classes: bool, tail: int):
    """Process one (row_tile, c_tile) logits tile of the (rows, classes) view."""
    k = pl.program_id(1)                      # class-tile index (reduction axis)

    @pl.when(k == 0)
    def _():
        m_sc[...] = jnp.full_like(m_sc, -jnp.inf)   # running max
        l_sc[...] = jnp.zeros_like(l_sc)            # running exp-sum
        t_sc[...] = jnp.zeros_like(t_sc)            # target-logit accumulator

    # Single read of the tile, kept in the input dtype (bf16 compares/selects/max
    # run packed 2-per-lane on v6e/v7x; exact, so accuracy is unchanged).
    x = logits_ref[...]                             # (R, Ct), input dtype
    tgt = targets_ref[...]                          # (R, 1) int32
    tgt_local = tgt - k * c_tile                    # per-row shift (cheap) instead of
                                                    # adding k*c_tile to every element

    def _update(xx):
        # Fused target-logit gather: at most one hit per row, so summing in the
        # native dtype is exact; only the (R,1) result is cast to f32.
        col = jax.lax.broadcasted_iota(jnp.int32, xx.shape, 1)
        hit = col == tgt_local
        t_sc[...] += jnp.sum(jnp.where(hit, xx, 0), axis=-1,
                             keepdims=True).astype(jnp.float32)

        # Online logsumexp recurrence (one pass per tile).
        m_prev = m_sc[...]
        tile_max = jnp.max(xx, axis=-1, keepdims=True).astype(jnp.float32)
        m_new = jnp.maximum(m_prev, tile_max)
        # First tile: m_prev == -inf, m_new finite -> exp(-inf) == 0, no NaN.
        p_sum = jnp.sum(jnp.exp(xx.astype(jnp.float32) - m_new),
                        axis=-1, keepdims=True)
        l_sc[...] = jnp.exp(m_prev - m_new) * l_sc[...] + p_sum
        m_sc[...] = m_new

    if mask_classes:
        # Class dim is ragged: only the LAST class tile needs the lane mask.
        is_last = k == pl.num_programs(1) - 1

        @pl.when(jnp.logical_not(is_last))
        def _():
            _update(x)

        @pl.when(is_last)
        def _():
            col = jax.lax.broadcasted_iota(jnp.int32, x.shape, 1)
            _update(jnp.where(col < tail, x, -jnp.inf))
    else:
        _update(x)

    @pl.when(k == pl.num_programs(1) - 1)
    def _():
        lse = m_sc[...] + jnp.log(l_sc[...])
        token_loss = lse - t_sc[...]
        # CrossEntropyLoss(ignore_index=-1, reduction='none') -> 0 at ignored slots.
        # This also zeroes any garbage computed for out-of-bounds (padded) rows.
        out_ref[...] = jnp.where(tgt != -1, token_loss, 0.0)


def max_loss(logits, targets, gamma: float = 1.0, *,
             row_tile: int = 256, c_tile: int | None = None):
    """Forward pass of MaxLoss. logits: (B, S, C); targets: (B, S) int, -1 = ignore."""
    assert logits.ndim == 3
    B, S, C = logits.shape
    N = B * S

    x = logits.reshape(N, C)                       # free collapse (row-major view)
    t = targets.reshape(N, 1).astype(jnp.int32)

    itemsize = jnp.dtype(logits.dtype).itemsize
    if c_tile is None:
        # ~4 MiB logits block regardless of dtype (8 MiB double-buffered).
        c_tile = 4096 if itemsize >= 4 else 8192

    # Tile sizes: last-two block dims must be multiples of (8, 128) or the full dim.
    # (For best v7x megacore balance, keep N // r_t >= 2 on real shapes.)
    r_t = N if N <= row_tile else max(8, (row_tile // 8) * 8)
    c_t = C if C <= c_tile else max(128, (c_tile // 128) * 128)

    n_row_tiles = pl.cdiv(N, r_t)
    n_cls_tiles = pl.cdiv(C, c_t)
    grid = (n_row_tiles, n_cls_tiles)

    mask_classes = (C % c_t) != 0                  # ragged last class tile?
    tail = (C % c_t) if mask_classes else c_t      # valid lanes in the last class tile

    # Pad ONLY the tiny targets array (the big logits array is never copied).
    # Padded rows get target = -1 -> token_loss 0 in-kernel.
    n_pad = n_row_tiles * r_t
    if n_pad != N:
        t = jnp.pad(t, ((0, n_pad - N), (0, 0)), constant_values=-1)

    kernel = functools.partial(
        _max_loss_kernel, c_tile=c_t, mask_classes=mask_classes, tail=tail)

    block_bytes = r_t * c_t * itemsize
    # Cover double-buffered logits blocks + intermediates; cap at v7x's 64 MiB VMEM.
    vmem_limit = int(min(64 << 20, max(24 << 20, 4 * block_bytes + (4 << 20))))

    cost = pl.CostEstimate(
        flops=6 * N * C,                           # compares/selects/subs/max per elem
        transcendentals=N * C + N,                 # exp per element + log per row
        bytes_accessed=N * C * itemsize + 3 * n_pad * 4,
    )

    token_loss = pl.pallas_call(
        kernel,
        out_shape=jax.ShapeDtypeStruct((n_pad, 1), jnp.float32),
        grid_spec=pltpu.PrefetchScalarGridSpec(
            num_scalar_prefetch=0,
            grid=grid,
            in_specs=[
                # logits tile: rows on sublanes, classes on lanes (double-buffered DMA)
                pl.BlockSpec((r_t, c_t), lambda i, k: (i, k)),
                # targets: resident across the class-reduction axis
                pl.BlockSpec((r_t, 1), lambda i, k: (i, 0)),
            ],
            # per-row token_loss, resident across k, written at the last class tile
            out_specs=pl.BlockSpec((r_t, 1), lambda i, k: (i, 0)),
            scratch_shapes=[
                pltpu.VMEM((r_t, 1), jnp.float32),   # running max m
                pltpu.VMEM((r_t, 1), jnp.float32),   # running exp-sum l
                pltpu.VMEM((r_t, 1), jnp.float32),   # target-logit accumulator
            ],
        ),
        compiler_params=pltpu.CompilerParams(
            dimension_semantics=("parallel", "arbitrary"),
            vmem_limit_bytes=vmem_limit),
        cost_estimate=cost,
    )(x, t)

    # IMPORTANT: slice to the real rows BEFORE any reduction (out-of-bounds rows are
    # already zeroed in-kernel, but we never rely on their values).
    token_loss = token_loss[:N, 0].reshape(B, S)    # (B, S); 0 at ignored positions

    active = (targets != -1)
    n_active = jnp.sum(active.astype(jnp.float32))
    # Matches the PyTorch reference: NaN if every target is -1.
    loss = jnp.sum(token_loss) / n_active
    if gamma > 0:   # static Python branch, mirrors `if self.gamma > 0:`
        loss = loss + gamma * jnp.mean(jnp.max(token_loss, axis=1))
    return loss


def max_loss_reference(logits, targets, gamma: float = 1.0):
    """Plain-JAX reference mirroring the PyTorch module."""
    logits = logits.astype(jnp.float32)
    lse = jax.nn.logsumexp(logits, axis=-1)
    safe_tgt = jnp.where(targets == -1, 0, targets)
    tgt_logit = jnp.take_along_axis(logits, safe_tgt[..., None], axis=-1)[..., 0]
    active = targets != -1
    token_loss = jnp.where(active, lse - tgt_logit, 0.0)
    loss = jnp.sum(token_loss) / jnp.sum(active.astype(jnp.float32))
    if gamma > 0:
        loss = loss + gamma * jnp.mean(jnp.max(token_loss, axis=1))
    return loss


def _make_inputs(key, B, S, C):
    k_logits, k_tgt, k_mask = jax.random.split(key, 3)
    logits = jax.random.normal(k_logits, (B, S, C), dtype=jnp.float32)
    targets = jax.random.randint(k_tgt, (B, S), 0, C, dtype=jnp.int32)
    ignore = jax.random.uniform(k_mask, (B, S)) < 0.25    # ~25% padded tokens
    targets = jnp.where(ignore, -1, targets)
    return logits, targets


if __name__ == "__main__":
    key = jax.random.PRNGKey(0)
    k1, k2, k3, k4 = jax.random.split(key, 4)

    # Case 1: module-scale small shapes (single-tile path, full-dim blocks).
    logits1, targets1 = _make_inputs(k1, B=2, S=8, C=32)
    out1 = jax.block_until_ready(max_loss(logits1, targets1, gamma=1.0))
    ref1 = max_loss_reference(logits1, targets1, gamma=1.0)
    assert jnp.allclose(out1, ref1, rtol=1e-5, atol=1e-4), (out1, ref1)

    # Case 2: multi-tile grid (even division) — online logsumexp across class tiles,
    # row-parallel grid axis, no masking path.
    logits2, targets2 = _make_inputs(k2, B=2, S=32, C=256)
    out2 = jax.block_until_ready(
        max_loss(logits2, targets2, gamma=0.5, row_tile=16, c_tile=128))
    ref2 = max_loss_reference(logits2, targets2, gamma=0.5)
    assert jnp.allclose(out2, ref2, rtol=1e-5, atol=1e-4), (out2, ref2)

    # Case 3: ragged rows AND classes — cdiv grid, un-padded logits, targets padded
    # with -1, last-class-tile lane mask.
    logits3, targets3 = _make_inputs(k3, B=2, S=25, C=200)
    out3 = jax.block_until_ready(
        max_loss(logits3, targets3, gamma=1.0, row_tile=16, c_tile=128))
    ref3 = max_loss_reference(logits3, targets3, gamma=1.0)
    assert jnp.allclose(out3, ref3, rtol=1e-5, atol=1e-4), (out3, ref3)

    # Case 4: bf16 logits — deferred-cast path (max/select in bf16, exp/accum in f32).
    logits4, targets4 = _make_inputs(k4, B=2, S=25, C=200)
    logits4 = logits4.astype(jnp.bfloat16)
    out4 = jax.block_until_ready(
        max_loss(logits4, targets4, gamma=1.0, row_tile=16, c_tile=128))
    ref4 = max_loss_reference(logits4, targets4, gamma=1.0)
    assert jnp.allclose(out4, ref4, rtol=1e-4, atol=1e-3), (out4, ref4)

    print("KERNEL_OK")
</pallas_src>

<mosaic_0001>
module attributes {stable_mosaic.version = 11 : i64} {
  func.func @_max_loss_kernel(%arg0: i32, %arg1: i32, %arg2: memref<16x32xf32, #tpu.memory_space<vmem>>, %arg3: memref<16x1xi32, #tpu.memory_space<vmem>>, %arg4: memref<16x1xf32, #tpu.memory_space<vmem>>, %arg5: memref<16x1xf32, #tpu.memory_space<vmem>>, %arg6: memref<16x1xf32, #tpu.memory_space<vmem>>, %arg7: memref<16x1xf32, #tpu.memory_space<vmem>>) attributes {dimension_semantics = [#tpu.dimension_semantics<parallel>, #tpu.dimension_semantics<arbitrary>], iteration_bounds = array<i64: 1, 1>, scalar_prefetch = 0 : i64, scratch_operands = 3 : i64, tpu.core_type = #tpu.core_type<tc>, window_params = [{transform_indices = @transform_0, window_bounds = array<i64: 16, 32>}, {transform_indices = @transform_1, window_bounds = array<i64: 16, 1>}, {transform_indices = @transform_2, window_bounds = array<i64: 16, 1>}]} {
    %c0_i32 = arith.constant 0 : i32
    %0 = arith.cmpi eq, %arg1, %c0_i32 : i32
    %1 = arith.extui %0 : i1 to i32
    %c0_i32_0 = arith.constant 0 : i32
    %2 = arith.cmpi ne, %1, %c0_i32_0 : i32
    scf.if %2 {
      %cst_21 = arith.constant 0xFF800000 : f32
      %38 = vector.broadcast %cst_21 : f32 to vector<16x1xf32>
      %c0_22 = arith.constant 0 : index
      %c0_23 = arith.constant 0 : index
      %39 = vector.load %arg5[%c0_22, %c0_23] : memref<16x1xf32, #tpu.memory_space<vmem>>, vector<16x1xf32>
      tpu.vector_store %arg5[%c0_22, %c0_23], %38 {strides = array<i32>} : memref<16x1xf32, #tpu.memory_space<vmem>>, vector<16x1xf32>,
      %cst_24 = arith.constant 0.000000e+00 : f32
      %40 = vector.broadcast %cst_24 : f32 to vector<16x1xf32>
      %c0_25 = arith.constant 0 : index
      %c0_26 = arith.constant 0 : index
      %41 = vector.load %arg6[%c0_25, %c0_26] : memref<16x1xf32, #tpu.memory_space<vmem>>, vector<16x1xf32>
      tpu.vector_store %arg6[%c0_25, %c0_26], %40 {strides = array<i32>} : memref<16x1xf32, #tpu.memory_space<vmem>>, vector<16x1xf32>,
      %cst_27 = arith.constant 0.000000e+00 : f32
      %42 = vector.broadcast %cst_27 : f32 to vector<16x1xf32>
      %c0_28 = arith.constant 0 : index
      %c0_29 = arith.constant 0 : index
      %43 = vector.load %arg7[%c0_28, %c0_29] : memref<16x1xf32, #tpu.memory_space<vmem>>, vector<16x1xf32>
      tpu.vector_store %arg7[%c0_28, %c0_29], %42 {strides = array<i32>} : memref<16x1xf32, #tpu.memory_space<vmem>>, vector<16x1xf32>,
    } else {
    }
    %c0 = arith.constant 0 : index
    %c0_1 = arith.constant 0 : index
    %3 = vector.load %arg2[%c0, %c0_1] : memref<16x32xf32, #tpu.memory_space<vmem>>, vector<16x32xf32>
    %c0_2 = arith.constant 0 : index
    %c0_3 = arith.constant 0 : index
    %4 = vector.load %arg3[%c0_2, %c0_3] : memref<16x1xi32, #tpu.memory_space<vmem>>, vector<16x1xi32>
    %c32_i32 = arith.constant 32 : i32
    %5 = arith.muli %arg1, %c32_i32 : i32
    %6 = vector.broadcast %5 : i32 to vector<16x1xi32>
    %7 = arith.subi %4, %6 : vector<16x1xi32>
    %8 = tpu.iota {dimensions = array<i32: 1>} : vector<16x32xi32>
    %9 = vector.broadcast %7 : vector<16x1xi32> to vector<16x32xi32>
    %10 = arith.cmpi eq, %8, %9 : vector<16x32xi32>
    %c0_4 = arith.constant 0 : index
    %c0_5 = arith.constant 0 : index
    %11 = vector.load %arg7[%c0_4, %c0_5] : memref<16x1xf32, #tpu.memory_space<vmem>>, vector<16x1xf32>
    %c0_i32_6 = arith.constant 0 : i32
    %12 = arith.sitofp %c0_i32_6 : i32 to f32
    %13 = vector.broadcast %12 : f32 to vector<16x32xf32>
    %14 = arith.select %10, %3, %13 : vector<16x32xi1>, vector<16x32xf32>
    %cst = arith.constant dense<0.000000e+00> : vector<16xf32>
    %15 = vector.multi_reduction <add>, %14, %cst [1] : vector<16x32xf32> to vector<16xf32>
    %16 = vector.shape_cast %15 : vector<16xf32> to vector<16x1xf32>
    %17 = arith.addf %11, %16 : vector<16x1xf32>
    %c0_7 = arith.constant 0 : index
    %c0_8 = arith.constant 0 : index
    %18 = vector.load %arg7[%c0_7, %c0_8] : memref<16x1xf32, #tpu.memory_space<vmem>>, vector<16x1xf32>
    tpu.vector_store %arg7[%c0_7, %c0_8], %17 {strides = array<i32>} : memref<16x1xf32, #tpu.memory_space<vmem>>, vector<16x1xf32>,
    %c0_9 = arith.constant 0 : index
    %c0_10 = arith.constant 0 : index
    %19 = vector.load %arg5[%c0_9, %c0_10] : memref<16x1xf32, #tpu.memory_space<vmem>>, vector<16x1xf32>
    %cst_11 = arith.constant dense<0xFF800000> : vector<16xf32>
    %20 = vector.multi_reduction <maximumf>, %3, %cst_11 [1] : vector<16x32xf32> to vector<16xf32>
    %21 = vector.shape_cast %20 : vector<16xf32> to vector<16x1xf32>
    %22 = arith.maximumf %19, %21 : vector<16x1xf32>
    %23 = vector.broadcast %22 : vector<16x1xf32> to vector<16x32xf32>
    %24 = arith.subf %3, %23 : vector<16x32xf32>
    %25 = math.exp %24 : vector<16x32xf32>
    %cst_12 = arith.constant dense<0.000000e+00> : vector<16xf32>
    %26 = vector.multi_reduction <add>, %25, %cst_12 [1] : vector<16x32xf32> to vector<16xf32>
    %27 = vector.shape_cast %26 : vector<16xf32> to vector<16x1xf32>
    %28 = arith.subf %19, %22 : vector<16x1xf32>
    %29 = math.exp %28 : vector<16x1xf32>
    %c0_13 = arith.constant 0 : index
    %c0_14 = arith.constant 0 : index
    %30 = vector.load %arg6[%c0_13, %c0_14] : memref<16x1xf32, #tpu.memory_space<vmem>>, vector<16x1xf32>
    %31 = arith.mulf %29, %30 : vector<16x1xf32>
    %32 = arith.addf %31, %27 : vector<16x1xf32>
    %c0_15 = arith.constant 0 : index
    %c0_16 = arith.constant 0 : index
    %33 = vector.load %arg6[%c0_15, %c0_16] : memref<16x1xf32, #tpu.memory_space<vmem>>, vector<16x1xf32>
    tpu.vector_store %arg6[%c0_15, %c0_16], %32 {strides = array<i32>} : memref<16x1xf32, #tpu.memory_space<vmem>>, vector<16x1xf32>,
    %c0_17 = arith.constant 0 : index
    %c0_18 = arith.constant 0 : index
    %34 = vector.load %arg5[%c0_17, %c0_18] : memref<16x1xf32, #tpu.memory_space<vmem>>, vector<16x1xf32>
    tpu.vector_store %arg5[%c0_17, %c0_18], %22 {strides = array<i32>} : memref<16x1xf32, #tpu.memory_space<vmem>>, vector<16x1xf32>,
    %c0_i32_19 = arith.constant 0 : i32
    %35 = arith.cmpi eq, %arg1, %c0_i32_19 : i32
    %36 = arith.extui %35 : i1 to i32
    %c0_i32_20 = arith.constant 0 : i32
    %37 = arith.cmpi ne, %36, %c0_i32_20 : i32
    scf.if %37 {
      %c0_21 = arith.constant 0 : index
      %c0_22 = arith.constant 0 : index
      %38 = vector.load %arg5[%c0_21, %c0_22] : memref<16x1xf32, #tpu.memory_space<vmem>>, vector<16x1xf32>
      %c0_23 = arith.constant 0 : index
      %c0_24 = arith.constant 0 : index
      %39 = vector.load %arg6[%c0_23, %c0_24] : memref<16x1xf32, #tpu.memory_space<vmem>>, vector<16x1xf32>
      %40 = math.log %39 : vector<16x1xf32>
      %41 = arith.addf %38, %40 : vector<16x1xf32>
      %c0_25 = arith.constant 0 : index
      %c0_26 = arith.constant 0 : index
      %42 = vector.load %arg7[%c0_25, %c0_26] : memref<16x1xf32, #tpu.memory_space<vmem>>, vector<16x1xf32>
      %43 = arith.subf %41, %42 : vector<16x1xf32>
      %c-1_i32 = arith.constant -1 : i32
      %44 = vector.broadcast %c-1_i32 : i32 to vector<16x1xi32>
      %45 = arith.cmpi ne, %4, %44 : vector<16x1xi32>
      %cst_27 = arith.constant 0.000000e+00 : f32
      %46 = vector.broadcast %cst_27 : f32 to vector<16x1xf32>
      %47 = arith.select %45, %43, %46 : vector<16x1xi1>, vector<16x1xf32>
      %c0_28 = arith.constant 0 : index
      %c0_29 = arith.constant 0 : index
      %48 = vector.load %arg4[%c0_28, %c0_29] : memref<16x1xf32, #tpu.memory_space<vmem>>, vector<16x1xf32>
      tpu.vector_store %arg4[%c0_28, %c0_29], %47 {strides = array<i32>} : memref<16x1xf32, #tpu.memory_space<vmem>>, vector<16x1xf32>,
    } else {
    }
    return
  }
  func.func @transform_0(%arg0: i32, %arg1: i32) -> (i32, i32) {
    %c0_i32 = arith.constant 0 : i32
    return %arg0, %arg1 : i32, i32
  }
  func.func @transform_1(%arg0: i32, %arg1: i32) -> (i32, i32) {
    %c0_i32 = arith.constant 0 : i32
    %c0_i32_0 = arith.constant 0 : i32
    return %arg0, %c0_i32 : i32, i32
  }
  func.func @transform_2(%arg0: i32, %arg1: i32) -> (i32, i32) {
    %c0_i32 = arith.constant 0 : i32
    %c0_i32_0 = arith.constant 0 : i32
    return %arg0, %c0_i32 : i32, i32
  }
}

</mosaic_0001>

<bundles_post_ra>
// kernel: tpu_custom_call.1
= control target key start
LH: loop header
LB: loop body
LE: loop exit
PB: predicated region body
PF: predicated region fallthrough
CT: control target
= control target key end

     0   :  { %vm44_vm0 = vcmask 261120   ;;  %vm15_vm1 = vcmask 7168   ;;  %v148_v2 = vmov -inf   ;;  %v149_v5 = vmov 0   ;;  %s212_s0 = inlined_call_operand.vmem [shape: f32[16,32], index: 0, kind: input, shape index: {}]   ;;  %s213_s1 = inlined_call_operand.vmem [shape: s32[16,1], index: 1, kind: input, shape index: {}]   ;;  %s214_s2 = inlined_call_operand.vmem [shape: f32[16,1], index: 2, kind: output, shape index: {}]  }
   0x1   :  { %v22_v0 = vld [vmem:[%s212_s0] sm:$0xff]  ;;  %v23_v1 = vld [vmem:[%s212_s0 + $0x8] sm:$0xff]  ;;  %16 = vst.msk [vmem:[#allocation2] sm:$0xff] %vm15_vm1, %v148_v2  ;;  %17 = vst.msk [vmem:[#allocation2 + $0x8] sm:$0xff] %vm15_vm1, %v148_v2  ;;  %134 = vset.pattern.permute.xlu1 %v149_v5  ;;  %135 = vset.pattern.permute.xlu0 %v149_v5  ;;  %v150_v6 = vmov 0.0   ;;  %v30_v17 = vlaneseq }
   0x2   :  { %v58_v3 = vsel %vm44_vm0, %v22_v0, -inf  ;;  %v61_v4 = vsel %vm44_vm0, %v23_v1, -inf  ;;  %18 = vst.msk [vmem:[#allocation3] sm:$0xff] %vm15_vm1, %v150_v6  ;;  %19 = vst.msk [vmem:[#allocation3 + $0x8] sm:$0xff] %vm15_vm1, %v150_v6  ;;  %v183_v7 = vld [vmem:[%s213_s1] sm:$0xff]  ;;  %v191_v16 = vld [vmem:[%s213_s1 + $0x8] sm:$0xff] }
   0x3   :  { %59 = vmax.xlane.f32.xlu0 %v58_v3  ;;  %20 = vst.msk [vmem:[#allocation4] sm:$0xff] %vm15_vm1, %v150_v6  ;;  %21 = vst.msk [vmem:[#allocation4 + $0x8] sm:$0xff] %vm15_vm1, %v150_v6  ;;  %v31_v18 = vand.u32 127, %v30_v17  ;;  %vm121_vm4 = vcmp.ne.s32.totalorder %v183_v7, 4294967295  ;;  %vm122_vm5 = vcmp.ne.s32.totalorder %v191_v16, 4294967295 }
   0x7   :  { %62 = vmax.xlane.f32.xlu0 %v61_v4 }
   0x8   :  { %v56_v8 = vld [vmem:[#allocation2] sm:$0xff]  ;;  %v57_v11 = vld [vmem:[#allocation2 + $0x8] sm:$0xff] }
   0x9   :  { %v94_v41 = vld [vmem:[#allocation3] sm:$0xff]  ;;  %v95_v45 = vld [vmem:[#allocation3 + $0x8] sm:$0xff] }
   0xa   :  { %v40_v35 = vld [vmem:[#allocation4] sm:$0xff]  ;;  %v41_v50 = vld [vmem:[#allocation4 + $0x8] sm:$0xff] }
  0x1d   :  { %33 = vperm.xlu0 %135, %v183_v7  }
  0x90   :  { %v60_v9 = vpop.xlane.xlu0 %59 }
  0x91   :  { %v64_v10 = vmax.f32 %v56_v8, %v60_v9 }
  0x93   :  { %v88_v12 = vsub.f32 %v56_v8, %v64_v10  ;;  %102 = vst.msk [vmem:[#allocation2] sm:$0xff] %vm15_vm1, %v64_v10  ;;  %68 = vperm.xlu1 %134, %v64_v10  }
  0x94   :  { %v63_v13 = vpop.xlane.xlu0 %62 }
  0x95   :  { %v65_v14 = vmax.f32 %v57_v11, %v63_v13  ;;  %v90_v38 = vmul.f32 1.442695, %v88_v12 }
  0x97   :  { %v89_v15 = vsub.f32 %v57_v11, %v65_v14  ;;  %103 = vst.msk [vmem:[#allocation2 + $0x8] sm:$0xff] %vm15_vm1, %v65_v14  ;;  %73 = vperm.xlu1 %134, %v65_v14  }
  0x99   :  { %v92_v39 = vmul.f32 1.442695, %v89_v15 }
  0x9a   :  { %v107_v57 = vld [vmem:[#allocation2] sm:$0xff] }
  0x9b   :  { %36 = vperm.xlu1 %134, %v191_v16  }
  0x9c   :  { %v34_v19 = vpop.permute.xlu0 %33 }
  0x9d   :  { %vm38_vm2 = vcmp.eq.s32.totalorder %v31_v18, %v34_v19 }
  0x9e   :  { %v42_v20 = vsel %vm38_vm2, %v22_v0, 0.0  ;;  %v108_v63 = vld [vmem:[#allocation2 + $0x8] sm:$0xff] }
  0x9f   :  { %v45_v21 = vsel %vm44_vm0, %v42_v20, 0.0 }
  0xa0   :  { %46 = vadd.xlane.f32.xlu0 %v45_v21 }
 0x112   :  { %v69_v22 = vpop.permute.xlu1 %68 }
 0x113   :  { %v76_v23 = vsub.f32 %v22_v0, %v69_v22 }
 0x115   :  { %v78_v24 = vmul.f32 1.442695, %v76_v23 }
 0x116   :  { %v74_v25 = vpop.permute.xlu1 %73 }
 0x117   :  { %136 = vpow2.f32 %v78_v24  ;;  %v77_v26 = vsub.f32 %v23_v1, %v74_v25 }
 0x119   :  { %v80_v27 = vmul.f32 1.442695, %v77_v26 }
 0x11a   :  { %v37_v29 = vpop.permute.xlu1 %36 }
 0x11b   :  { %138 = vpow2.f32 %v80_v27  ;;  %vm39_vm3 = vcmp.eq.s32.totalorder %v31_v18, %v37_v29 }
 0x11c   :  { %v43_v33 = vsel %vm39_vm3, %v23_v1, 0.0  ;;  %140 = vpow2.f32 %v90_v38 }
 0x11d   :  { %v48_v34 = vsel %vm44_vm0, %v43_v33, 0.0  ;;  %142 = vpow2.f32 %v92_v39 }
 0x121   :  { %v137_v28 = vpop.eup %136 }
 0x122   :  { %v82_v30 = vsel %vm44_vm0, %v137_v28, 0.0 }
 0x123   :  { %83 = vadd.xlane.f32.xlu1 %v82_v30 }
 0x125   :  { %v139_v31 = vpop.eup %138 }
 0x126   :  { %v85_v32 = vsel %vm44_vm0, %v139_v31, 0.0  ;;  %v141_v40 = vpop.eup %140 }
 0x127   :  { %86 = vadd.xlane.f32.xlu1 %v85_v32  ;;  %v96_v42 = vmul.f32 %v141_v40, %v94_v41  ;;  %v143_v43 = vpop.eup %142 }
 0x128   :  { %v97_v47 = vmul.f32 %v143_v43, %v95_v45 }
 0x12b   :  { %49 = vadd.xlane.f32.xlu1 %v48_v34 }
 0x12d   :  { %v47_v36 = vpop.xlane.xlu0 %46 }
 0x12e   :  { %v51_v37 = vadd.f32 %v47_v36, %v40_v35 }
 0x130   :  { %54 = vst.msk [vmem:[#allocation4] sm:$0xff] %vm15_vm1, %v51_v37 }
 0x137   :  { %v117_v58 = vld [vmem:[#allocation4] sm:$0xff] }
 0x1b0   :  { %v84_v44 = vpop.xlane.xlu1 %83 }
 0x1b1   :  { %v98_v46 = vadd.f32 %v96_v42, %v84_v44 }
 0x1b3   :  { %100 = vst.msk [vmem:[#allocation3] sm:$0xff] %vm15_vm1, %v98_v46 }
 0x1b4   :  { %v87_v48 = vpop.xlane.xlu1 %86 }
 0x1b5   :  { %v99_v49 = vadd.f32 %v97_v47, %v87_v48 }
 0x1b7   :  { %101 = vst.msk [vmem:[#allocation3 + $0x8] sm:$0xff] %vm15_vm1, %v99_v49 }
 0x1b8   :  { %v50_v51 = vpop.xlane.xlu1 %49 }
 0x1b9   :  { %v52_v52 = vadd.f32 %v50_v51, %v41_v50 }
 0x1ba   :  { %v109_v53 = vld [vmem:[#allocation3] sm:$0xff] }
 0x1bb   :  { %144 = vlog2.f32 %v109_v53  ;;  %55 = vst.msk [vmem:[#allocation4 + $0x8] sm:$0xff] %vm15_vm1, %v52_v52 }
 0x1be   :  { %v110_v54 = vld [vmem:[#allocation3 + $0x8] sm:$0xff] }
 0x1bf   :  { %146 = vlog2.f32 %v110_v54 }
 0x1c2   :  { %v118_v2 = vld [vmem:[#allocation4 + $0x8] sm:$0xff] }
 0x1c5   :  { %v145_v55 = vpop.eup %144 }
 0x1c6   :  { %v112_v56 = vmul.f32 0.6931472, %v145_v55 }
 0x1c8   :  { %v115_v59 = vadd.f32 %v112_v56, %v107_v57 }
 0x1c9   :  { %v147_v60 = vpop.eup %146 }
 0x1ca   :  { %v114_v61 = vmul.f32 0.6931472, %v147_v60  ;;  %v119_v62 = vsub.f32 %v115_v59, %v117_v58 }
 0x1cc   :  { %v116_v0 = vadd.f32 %v114_v61, %v108_v63  ;;  %v123_v1 = vsel %vm121_vm4, %v119_v62, 0.0 }
 0x1cd   :  { %125 = vst.msk [vmem:[%s214_s2] sm:$0xff] %vm15_vm1, %v123_v1 }
 0x1ce   :  { %v120_v3 = vsub.f32 %v116_v0, %v118_v2 }
 0x1d0   :  { %v124_v4 = vsel %vm122_vm5, %v120_v3, 0.0 }
 0x1d1   :  { %126 = vst.msk [vmem:[%s214_s2 + $0x8] sm:$0xff] %vm15_vm1, %v124_v4 }

</bundles_post_ra>
